<compile_context>
chip_gen: v5e
topology: v5e:2x2
jax: 0.10.0
libtpu: 0.0.40
codegen_flags: <defaults>
</compile_context>

<pallas_src>
import functools

import jax
import jax.numpy as jnp
from jax import lax
from jax.experimental import pallas as pl
from jax.experimental.pallas import tpu as pltpu


_MASK_VALUE = -1e30  # finite "minus infinity" for masked (padded) key columns


def _vmem_limit_bytes():
    # ~100 MiB on 128-MiB parts (v5e/v6e); leaves headroom under 64 MiB on v7x.
    try:
        cap = int(pltpu.get_tpu_info().vmem_capacity_bytes)
    except Exception:
        cap = 128 * 1024 * 1024
    return int(min(cap - 8 * 1024 * 1024, 100 * 1024 * 1024))


def _seq_tiling(S):
    """Return (tile, padded_seq_len) for the sequence axis."""
    if S % 256 == 0:
        return 256, S
    if S % 128 == 0:
        return 128, S
    if S <= 256:
        return S, S                          # single full-extent tile, no mask
    t = 256
    return t, ((S + t - 1) // t) * t         # pad + mask tail key columns


def _m_tiling(M):
    """Return (tile, padded_rows) for the flattened (B*S) row axis."""
    for c in (512, 256, 128):
        if M % c == 0:
            return c, M
    if M <= 1024:
        return M, M                          # small irregular extent: one tile
    return 128, ((M + 127) // 128) * 128     # pad rows, slice off afterwards


# ----------------------------------------------------------------------------
# Kernel 1: fused K/V projection over flattened (B*S) rows  ->  bf16 outputs
# ----------------------------------------------------------------------------
def _kv_proj_kernel(x_ref, wk_ref, wv_ref, bk_ref, bv_ref, k_ref, v_ref):
    xb = x_ref[...].astype(jnp.bfloat16)                          # (tm, D)
    k_ref[...] = (jnp.dot(xb, wk_ref[...], preferred_element_type=jnp.float32)
                  + bk_ref[0][None, :]).astype(k_ref.dtype)
    v_ref[...] = (jnp.dot(xb, wv_ref[...], preferred_element_type=jnp.float32)
                  + bv_ref[0][None, :]).astype(v_ref.dtype)


# ----------------------------------------------------------------------------
# Kernel 2: in-kernel Q projection + flash attention + fc + residual
# ----------------------------------------------------------------------------
def _flash_attn_fc_kernel(x_ref, wq_ref, bq_ref, k_ref, v_ref, wfc_ref, bfc_ref,
                          o_ref, q_sc, m_sc, l_sc, acc_sc, *,
                          tk, seq_len, sliced_kv, mask_keys):
    ki = pl.program_id(2)

    @pl.when(ki == 0)
    def _init():
        m_sc[...] = jnp.full(m_sc.shape, -jnp.inf, dtype=m_sc.dtype)
        l_sc[...] = jnp.zeros(l_sc.shape, dtype=l_sc.dtype)
        acc_sc[...] = jnp.zeros(acc_sc.shape, dtype=acc_sc.dtype)
        # Q computed once per (b, qi) from the resident x tile; 1/sqrt(D) is
        # already folded into wq/bq in the wrapper (no per-step scaling).
        xb = x_ref[0].astype(jnp.bfloat16)                        # (tq, D)
        q = jnp.dot(xb, wq_ref[...], preferred_element_type=jnp.float32)
        q_sc[...] = (q + bq_ref[0][None, :]).astype(q_sc.dtype)

    if sliced_kv:
        ks = pl.multiple_of(ki * tk, 128)
        k = k_ref[0, pl.ds(ks, tk), :]                            # (tk, H) bf16
        v = v_ref[0, pl.ds(ks, tk), :]
    else:
        k = k_ref[0]                                              # (tk, H) bf16
        v = v_ref[0]

    # Contract the last axes directly (no explicit k^T through the XLU).
    s = lax.dot_general(q_sc[...], k, (((1,), (1,)), ((), ())),
                        preferred_element_type=jnp.float32)       # (tq, tk)
    if mask_keys:
        col = ki * tk + lax.broadcasted_iota(jnp.int32, s.shape, 1)
        s = jnp.where(col < seq_len, s, _MASK_VALUE)

    m_prev = m_sc[...]                                            # (tq, 128)
    m_new = jnp.maximum(m_prev, jnp.max(s, axis=-1, keepdims=True))
    alpha = jnp.exp(m_prev - m_new)                               # (tq, 128)
    p = jnp.exp(s - m_new[:, :1])                                 # (tq, tk)
    l_sc[...] = alpha * l_sc[...] + jnp.sum(p, axis=-1, keepdims=True)
    acc_sc[...] = alpha[:, :1] * acc_sc[...] + jnp.dot(
        p.astype(jnp.bfloat16), v, preferred_element_type=jnp.float32)
    m_sc[...] = m_new

    @pl.when(ki == pl.num_programs(2) - 1)
    def _finalize():
        # TODO(synk): dropout on attn is identity (eval mode).
        inv_l = pl.reciprocal(l_sc[...], approx=True)             # (tq, 128)
        attn_out = acc_sc[...] * inv_l[:, :1]                     # (tq, H) f32
        out = jnp.dot(attn_out.astype(jnp.bfloat16), wfc_ref[...],
                      preferred_element_type=jnp.float32)
        out = out + bfc_ref[0][None, :] + x_ref[0]                # bias+residual
        o_ref[0] = out.astype(o_ref.dtype)                        # lane dim = D


def attention_forward(x, w_qkv, b_qkv, w_fc, b_fc, *, model_dim, hidden_dim):
    """x: [B, S, D] float32 -> [B, D, S] float32."""
    B, S, D = x.shape
    assert D == model_dim
    H = hidden_dim
    inv_temp = 1.0 / (float(model_dim) ** 0.5)
    vmem_limit = _vmem_limit_bytes()

    # Lane-aligned split of the fused qkv weight.  inv_temp is folded into the
    # (tiny) Q weight/bias once; MXU weight operands are pre-cast to bf16 while
    # accumulation / biases / residual stay f32.
    w_q = (w_qkv[:, 0 * H:1 * H] * inv_temp).astype(jnp.bfloat16)
    w_k = w_qkv[:, 1 * H:2 * H].astype(jnp.bfloat16)
    w_v = w_qkv[:, 2 * H:3 * H].astype(jnp.bfloat16)
    b_q = b_qkv[:, 0 * H:1 * H] * inv_temp
    b_k = b_qkv[:, 1 * H:2 * H]
    b_v = b_qkv[:, 2 * H:3 * H]
    w_fc_bf = w_fc.astype(jnp.bfloat16)

    # Sequence tiling (pad + mask tail keys only for large irregular S).
    tq, S_pad = _seq_tiling(S)
    tk = tq
    nq = S_pad // tq
    nk = S_pad // tk
    mask_keys = S_pad != S
    x_p = x if S_pad == S else jnp.pad(x, ((0, 0), (0, S_pad - S), (0, 0)))

    # ---------------- Kernel 1: K/V projection, batch folded into M --------
    M = B * S_pad
    tm, M_pad = _m_tiling(M)
    x2d = x_p.reshape(M, D)
    if M_pad != M:
        x2d = jnp.pad(x2d, ((0, M_pad - M), (0, 0)))

    flops1 = 2 * M_pad * D * (2 * H)
    bytes1 = (4 * M_pad * D + 2 * (2 * D * H) + 2 * (4 * H)
              + 2 * (2 * M_pad * H))

    wspec = pl.BlockSpec((D, H), lambda i: (0, 0))
    bspec = pl.BlockSpec((1, H), lambda i: (0, 0))
    ospec = pl.BlockSpec((tm, H), lambda i: (i, 0))

    k2d, v2d = pl.pallas_call(
        _kv_proj_kernel,
        out_shape=(jax.ShapeDtypeStruct((M_pad, H), jnp.bfloat16),
                   jax.ShapeDtypeStruct((M_pad, H), jnp.bfloat16)),
        grid_spec=pltpu.PrefetchScalarGridSpec(
            num_scalar_prefetch=0,
            grid=(M_pad // tm,),
            in_specs=[
                pl.BlockSpec((tm, D), lambda i: (i, 0)),   # x rows
                wspec, wspec,                              # W_k, W_v (bf16)
                bspec, bspec,                              # b_k, b_v (f32)
            ],
            out_specs=(ospec, ospec),
        ),
        compiler_params=pltpu.CompilerParams(
            dimension_semantics=("parallel",),
            vmem_limit_bytes=vmem_limit),
        cost_estimate=pl.CostEstimate(
            flops=int(flops1), transcendentals=0, bytes_accessed=int(bytes1)),
    )(x2d, w_k, w_v, b_k, b_v)

    if M_pad != M:
        k2d = k2d[:M]
        v2d = v2d[:M]
    k = k2d.reshape(B, S_pad, H)
    v = v2d.reshape(B, S_pad, H)

    # ---------------- Kernel 2: flash attention + fc + residual ------------
    # Keep K/V resident across (qi, ki) when they comfortably fit in VMEM
    # (constant block index -> fetched once per batch, no nq-fold re-stream);
    # otherwise stream (1, tk, H) tiles per k step.
    kv_bytes_resident = 2 * 2 * (S_pad * H * 2)   # k+v, double-buffered, bf16
    kv_resident = kv_bytes_resident <= 16 * 1024 * 1024
    sliced_kv = kv_resident and nk > 1

    if kv_resident:
        kv_spec = pl.BlockSpec((1, S_pad, H), lambda b, qi, ki: (b, 0, 0))
    else:
        kv_spec = pl.BlockSpec((1, tk, H), lambda b, qi, ki: (b, ki, 0))

    flops2 = B * (2 * S_pad * D * H + 4 * S_pad * S_pad * H
                  + 2 * S_pad * H * D)
    trans2 = B * S_pad * S_pad
    kv_bytes = (2 * 2 * B * S_pad * H if kv_resident
                else 2 * 2 * B * S_pad * H * nq)
    bytes2 = (kv_bytes
              + 4 * B * S_pad * D            # x (Q source + residual)
              + 2 * D * H + 4 * H            # W_q (bf16), b_q
              + 2 * H * D + 4 * D            # W_fc (bf16), b_fc
              + 4 * B * S_pad * D)           # output

    kernel2 = functools.partial(
        _flash_attn_fc_kernel, tk=tk, seq_len=S,
        sliced_kv=sliced_kv, mask_keys=mask_keys)

    out_bsd = pl.pallas_call(
        kernel2,
        out_shape=jax.ShapeDtypeStruct((B, S_pad, D), x.dtype),
        grid_spec=pltpu.PrefetchScalarGridSpec(
            num_scalar_prefetch=0,
            grid=(B, nq, nk),
            in_specs=[
                pl.BlockSpec((1, tq, D), lambda b, qi, ki: (b, qi, 0)),  # x
                pl.BlockSpec((D, H), lambda b, qi, ki: (0, 0)),          # W_q
                pl.BlockSpec((1, H), lambda b, qi, ki: (0, 0)),          # b_q
                kv_spec,                                                 # k
                kv_spec,                                                 # v
                pl.BlockSpec((H, D), lambda b, qi, ki: (0, 0)),          # W_fc
                pl.BlockSpec((1, D), lambda b, qi, ki: (0, 0)),          # b_fc
            ],
            out_specs=pl.BlockSpec((1, tq, D), lambda b, qi, ki: (b, qi, 0)),
            scratch_shapes=[
                pltpu.VMEM((tq, H), jnp.bfloat16),    # q tile (per (b, qi))
                pltpu.VMEM((tq, 128), jnp.float32),   # running max m (lane-rep)
                pltpu.VMEM((tq, 128), jnp.float32),   # running sum l (lane-rep)
                pltpu.VMEM((tq, H), jnp.float32),     # output accumulator
            ],
        ),
        compiler_params=pltpu.CompilerParams(
            dimension_semantics=("parallel", "parallel", "arbitrary"),
            vmem_limit_bytes=vmem_limit),
        cost_estimate=pl.CostEstimate(
            flops=int(flops2), transcendentals=int(trans2),
            bytes_accessed=int(bytes2)),
    )(x_p, w_q, b_q, k, v, w_fc_bf, b_fc)

    if S_pad != S:
        out_bsd = out_bsd[:, :S, :]

    # Final [B, S, D] -> [B, D, S] permute stays in XLA (layout plumbing);
    # keeps the kernel's store lane-dense (lane dim = D).
    return jnp.transpose(out_bsd, (0, 2, 1))


def _reference(x, w_qkv, b_qkv, w_fc, b_fc, model_dim):
    qkv = jnp.einsum("bsd,dh->bsh", x, w_qkv) + b_qkv[0]
    H = qkv.shape[-1] // 3
    q, k, v = qkv[..., :H], qkv[..., H:2 * H], qkv[..., 2 * H:]
    attn = jnp.einsum("bqh,bkh->bqk", q, k) / (model_dim ** 0.5)
    attn = jax.nn.softmax(attn, axis=-1)
    out = jnp.einsum("bqk,bkh->bqh", attn, v)
    out = jnp.einsum("bqh,hd->bqd", out, w_fc) + b_fc[0] + x
    return jnp.transpose(out, (0, 2, 1))


if __name__ == "__main__":
    # small, deterministic synthetic setup
    batch, seq, model_dim, hidden_dim = 2, 8, 32, 32

    key = jax.random.PRNGKey(0)
    kx, k1, k2, k3, k4 = jax.random.split(key, 5)

    x = jax.random.normal(kx, (batch, seq, model_dim), dtype=jnp.float32)

    # deterministic "init" of nn.Linear weights (stored as [in, out] for x @ W)
    w_qkv = jax.random.normal(k1, (model_dim, 3 * hidden_dim), jnp.float32) * 0.05
    b_qkv = jax.random.normal(k2, (1, 3 * hidden_dim), jnp.float32) * 0.05
    w_fc = jax.random.normal(k3, (hidden_dim, model_dim), jnp.float32) * 0.05
    b_fc = jax.random.normal(k4, (1, model_dim), jnp.float32) * 0.05

    fwd = jax.jit(functools.partial(attention_forward,
                                    model_dim=model_dim,
                                    hidden_dim=hidden_dim))
    out = fwd(x, w_qkv, b_qkv, w_fc, b_fc)
    out = jax.block_until_ready(out)

    ref = _reference(x, w_qkv, b_qkv, w_fc, b_fc, model_dim)
    assert out.shape == (batch, model_dim, seq)
    # bf16 MXU operands (f32 accumulation) + approx reciprocal -> slightly
    # looser tolerance than a pure-f32 comparison.
    assert jnp.allclose(out, ref, rtol=1e-2, atol=1e-2), "mismatch vs reference"

    print("KERNEL_OK")
</pallas_src>

<mosaic_0001>
module attributes {stable_mosaic.version = 11 : i64} {
  func.func @_kv_proj_kernel(%arg0: i32, %arg1: memref<16x32xf32, #tpu.memory_space<vmem>>, %arg2: memref<32x32xbf16, #tpu.memory_space<vmem>>, %arg3: memref<32x32xbf16, #tpu.memory_space<vmem>>, %arg4: memref<1x32xf32, #tpu.memory_space<vmem>>, %arg5: memref<1x32xf32, #tpu.memory_space<vmem>>, %arg6: memref<16x32xbf16, #tpu.memory_space<vmem>>, %arg7: memref<16x32xbf16, #tpu.memory_space<vmem>>) attributes {dimension_semantics = [#tpu.dimension_semantics<parallel>], iteration_bounds = array<i64: 1>, scalar_prefetch = 0 : i64, scratch_operands = 0 : i64, tpu.core_type = #tpu.core_type<tc>, window_params = [{transform_indices = @transform_0, window_bounds = array<i64: 16, 32>}, {pipeline_mode = #tpu.pipeline_mode<synchronous>, transform_indices = @transform_1, window_bounds = array<i64: 32, 32>}, {pipeline_mode = #tpu.pipeline_mode<synchronous>, transform_indices = @transform_2, window_bounds = array<i64: 32, 32>}, {pipeline_mode = #tpu.pipeline_mode<synchronous>, transform_indices = @transform_3, window_bounds = array<i64: 1, 32>}, {pipeline_mode = #tpu.pipeline_mode<synchronous>, transform_indices = @transform_4, window_bounds = array<i64: 1, 32>}, {transform_indices = @transform_5, window_bounds = array<i64: 16, 32>}, {transform_indices = @transform_6, window_bounds = array<i64: 16, 32>}]} {
    %c0 = arith.constant 0 : index
    %c0_0 = arith.constant 0 : index
    %0 = vector.load %arg1[%c0, %c0_0] : memref<16x32xf32, #tpu.memory_space<vmem>>, vector<16x32xf32>
    %1 = arith.truncf %0 : vector<16x32xf32> to vector<16x32xbf16>
    %c0_1 = arith.constant 0 : index
    %c0_2 = arith.constant 0 : index
    %2 = vector.load %arg2[%c0_1, %c0_2] : memref<32x32xbf16, #tpu.memory_space<vmem>>, vector<32x32xbf16>
    %cst = arith.constant dense<0.000000e+00> : vector<16x32xf32>
    %3 = tpu.matmul %1, %2, %cst {dimension_numbers = #tpu.dot_dimension_numbers<[1], [0], [0], [1], [0, 0, 1, 1], [], []>} : vector<16x32xbf16>, vector<32x32xbf16>, vector<16x32xf32> -> vector<16x32xf32>
    %c0_3 = arith.constant 0 : index
    %c0_4 = arith.constant 0 : index
    %4 = vector.load %arg4[%c0_3, %c0_4] : memref<1x32xf32, #tpu.memory_space<vmem>>, vector<1x32xf32>
    %5 = vector.shape_cast %4 : vector<1x32xf32> to vector<32xf32>
    %6 = vector.shape_cast %5 : vector<32xf32> to vector<1x32xf32>
    %7 = vector.broadcast %6 : vector<1x32xf32> to vector<16x32xf32>
    %8 = arith.addf %3, %7 : vector<16x32xf32>
    %9 = arith.truncf %8 : vector<16x32xf32> to vector<16x32xbf16>
    %c0_5 = arith.constant 0 : index
    %c0_6 = arith.constant 0 : index
    %10 = vector.load %arg6[%c0_5, %c0_6] : memref<16x32xbf16, #tpu.memory_space<vmem>>, vector<16x32xbf16>
    tpu.vector_store %arg6[%c0_5, %c0_6], %9 {strides = array<i32>} : memref<16x32xbf16, #tpu.memory_space<vmem>>, vector<16x32xbf16>,
    %c0_7 = arith.constant 0 : index
    %c0_8 = arith.constant 0 : index
    %11 = vector.load %arg3[%c0_7, %c0_8] : memref<32x32xbf16, #tpu.memory_space<vmem>>, vector<32x32xbf16>
    %cst_9 = arith.constant dense<0.000000e+00> : vector<16x32xf32>
    %12 = tpu.matmul %1, %11, %cst_9 {dimension_numbers = #tpu.dot_dimension_numbers<[1], [0], [0], [1], [0, 0, 1, 1], [], []>} : vector<16x32xbf16>, vector<32x32xbf16>, vector<16x32xf32> -> vector<16x32xf32>
    %c0_10 = arith.constant 0 : index
    %c0_11 = arith.constant 0 : index
    %13 = vector.load %arg5[%c0_10, %c0_11] : memref<1x32xf32, #tpu.memory_space<vmem>>, vector<1x32xf32>
    %14 = vector.shape_cast %13 : vector<1x32xf32> to vector<32xf32>
    %15 = vector.shape_cast %14 : vector<32xf32> to vector<1x32xf32>
    %16 = vector.broadcast %15 : vector<1x32xf32> to vector<16x32xf32>
    %17 = arith.addf %12, %16 : vector<16x32xf32>
    %18 = arith.truncf %17 : vector<16x32xf32> to vector<16x32xbf16>
    %c0_12 = arith.constant 0 : index
    %c0_13 = arith.constant 0 : index
    %19 = vector.load %arg7[%c0_12, %c0_13] : memref<16x32xbf16, #tpu.memory_space<vmem>>, vector<16x32xbf16>
    tpu.vector_store %arg7[%c0_12, %c0_13], %18 {strides = array<i32>} : memref<16x32xbf16, #tpu.memory_space<vmem>>, vector<16x32xbf16>,
    return
  }
  func.func @transform_0(%arg0: i32) -> (i32, i32) {
    %c0_i32 = arith.constant 0 : i32
    %c0_i32_0 = arith.constant 0 : i32
    return %arg0, %c0_i32 : i32, i32
  }
  func.func @transform_1(%arg0: i32) -> (i32, i32) {
    %c0_i32 = arith.constant 0 : i32
    %c0_i32_0 = arith.constant 0 : i32
    %c0_i32_1 = arith.constant 0 : i32
    return %c0_i32, %c0_i32_0 : i32, i32
  }
  func.func @transform_2(%arg0: i32) -> (i32, i32) {
    %c0_i32 = arith.constant 0 : i32
    %c0_i32_0 = arith.constant 0 : i32
    %c0_i32_1 = arith.constant 0 : i32
    return %c0_i32, %c0_i32_0 : i32, i32
  }
  func.func @transform_3(%arg0: i32) -> (i32, i32) {
    %c0_i32 = arith.constant 0 : i32
    %c0_i32_0 = arith.constant 0 : i32
    %c0_i32_1 = arith.constant 0 : i32
    return %c0_i32, %c0_i32_0 : i32, i32
  }
  func.func @transform_4(%arg0: i32) -> (i32, i32) {
    %c0_i32 = arith.constant 0 : i32
    %c0_i32_0 = arith.constant 0 : i32
    %c0_i32_1 = arith.constant 0 : i32
    return %c0_i32, %c0_i32_0 : i32, i32
  }
  func.func @transform_5(%arg0: i32) -> (i32, i32) {
    %c0_i32 = arith.constant 0 : i32
    %c0_i32_0 = arith.constant 0 : i32
    return %arg0, %c0_i32 : i32, i32
  }
  func.func @transform_6(%arg0: i32) -> (i32, i32) {
    %c0_i32 = arith.constant 0 : i32
    %c0_i32_0 = arith.constant 0 : i32
    return %arg0, %c0_i32 : i32, i32
  }
}

module attributes {stable_mosaic.version = 11 : i64} {
  func.func @_flash_attn_fc_kernel(%arg0: i32, %arg1: i32, %arg2: i32, %arg3: memref<1x8x32xf32, #tpu.memory_space<vmem>>, %arg4: memref<32x32xbf16, #tpu.memory_space<vmem>>, %arg5: memref<1x32xf32, #tpu.memory_space<vmem>>, %arg6: memref<1x8x32xbf16, #tpu.memory_space<vmem>>, %arg7: memref<1x8x32xbf16, #tpu.memory_space<vmem>>, %arg8: memref<32x32xbf16, #tpu.memory_space<vmem>>, %arg9: memref<1x32xf32, #tpu.memory_space<vmem>>, %arg10: memref<1x8x32xf32, #tpu.memory_space<vmem>>, %arg11: memref<8x32xbf16, #tpu.memory_space<vmem>>, %arg12: memref<8x128xf32, #tpu.memory_space<vmem>>, %arg13: memref<8x128xf32, #tpu.memory_space<vmem>>, %arg14: memref<8x32xf32, #tpu.memory_space<vmem>>) attributes {dimension_semantics = [#tpu.dimension_semantics<parallel>, #tpu.dimension_semantics<parallel>, #tpu.dimension_semantics<arbitrary>], iteration_bounds = array<i64: 2, 1, 1>, scalar_prefetch = 0 : i64, scratch_operands = 4 : i64, tpu.core_type = #tpu.core_type<tc>, window_params = [{transform_indices = @transform_0, window_bounds = array<i64: 1, 8, 32>}, {pipeline_mode = #tpu.pipeline_mode<synchronous>, transform_indices = @transform_1, window_bounds = array<i64: 32, 32>}, {pipeline_mode = #tpu.pipeline_mode<synchronous>, transform_indices = @transform_2, window_bounds = array<i64: 1, 32>}, {transform_indices = @transform_3, window_bounds = array<i64: 1, 8, 32>}, {transform_indices = @transform_4, window_bounds = array<i64: 1, 8, 32>}, {pipeline_mode = #tpu.pipeline_mode<synchronous>, transform_indices = @transform_5, window_bounds = array<i64: 32, 32>}, {pipeline_mode = #tpu.pipeline_mode<synchronous>, transform_indices = @transform_6, window_bounds = array<i64: 1, 32>}, {transform_indices = @transform_7, window_bounds = array<i64: 1, 8, 32>}]} {
    %c0_i32 = arith.constant 0 : i32
    %0 = arith.cmpi eq, %arg2, %c0_i32 : i32
    %1 = arith.extui %0 : i1 to i32
    %c0_i32_0 = arith.constant 0 : i32
    %2 = arith.cmpi ne, %1, %c0_i32_0 : i32
    scf.if %2 {
      %cst_25 = arith.constant 0xFF800000 : f32
      %39 = vector.broadcast %cst_25 : f32 to vector<8x128xf32>
      %c0_26 = arith.constant 0 : index
      %c0_27 = arith.constant 0 : index
      %40 = vector.load %arg12[%c0_26, %c0_27] : memref<8x128xf32, #tpu.memory_space<vmem>>, vector<8x128xf32>
      tpu.vector_store %arg12[%c0_26, %c0_27], %39 {strides = array<i32>} : memref<8x128xf32, #tpu.memory_space<vmem>>, vector<8x128xf32>,
      %cst_28 = arith.constant 0.000000e+00 : f32
      %41 = vector.broadcast %cst_28 : f32 to vector<8x128xf32>
      %c0_29 = arith.constant 0 : index
      %c0_30 = arith.constant 0 : index
      %42 = vector.load %arg13[%c0_29, %c0_30] : memref<8x128xf32, #tpu.memory_space<vmem>>, vector<8x128xf32>
      tpu.vector_store %arg13[%c0_29, %c0_30], %41 {strides = array<i32>} : memref<8x128xf32, #tpu.memory_space<vmem>>, vector<8x128xf32>,
      %cst_31 = arith.constant 0.000000e+00 : f32
      %43 = vector.broadcast %cst_31 : f32 to vector<8x32xf32>
      %c0_32 = arith.constant 0 : index
      %c0_33 = arith.constant 0 : index
      %44 = vector.load %arg14[%c0_32, %c0_33] : memref<8x32xf32, #tpu.memory_space<vmem>>, vector<8x32xf32>
      tpu.vector_store %arg14[%c0_32, %c0_33], %43 {strides = array<i32>} : memref<8x32xf32, #tpu.memory_space<vmem>>, vector<8x32xf32>,
      %c0_34 = arith.constant 0 : index
      %c0_35 = arith.constant 0 : index
      %c0_36 = arith.constant 0 : index
      %45 = vector.load %arg3[%c0_34, %c0_35, %c0_36] : memref<1x8x32xf32, #tpu.memory_space<vmem>>, vector<1x8x32xf32>
      %46 = vector.shape_cast %45 : vector<1x8x32xf32> to vector<8x32xf32>
      %47 = arith.truncf %46 : vector<8x32xf32> to vector<8x32xbf16>
      %c0_37 = arith.constant 0 : index
      %c0_38 = arith.constant 0 : index
      %48 = vector.load %arg4[%c0_37, %c0_38] : memref<32x32xbf16, #tpu.memory_space<vmem>>, vector<32x32xbf16>
      %cst_39 = arith.constant dense<0.000000e+00> : vector<8x32xf32>
      %49 = tpu.matmul %47, %48, %cst_39 {dimension_numbers = #tpu.dot_dimension_numbers<[1], [0], [0], [1], [0, 0, 1, 1], [], []>} : vector<8x32xbf16>, vector<32x32xbf16>, vector<8x32xf32> -> vector<8x32xf32>
      %c0_40 = arith.constant 0 : index
      %c0_41 = arith.constant 0 : index
      %50 = vector.load %arg5[%c0_40, %c0_41] : memref<1x32xf32, #tpu.memory_space<vmem>>, vector<1x32xf32>
      %51 = vector.shape_cast %50 : vector<1x32xf32> to vector<32xf32>
      %52 = vector.shape_cast %51 : vector<32xf32> to vector<1x32xf32>
      %53 = vector.broadcast %52 : vector<1x32xf32> to vector<8x32xf32>
      %54 = arith.addf %49, %53 : vector<8x32xf32>
      %55 = arith.truncf %54 : vector<8x32xf32> to vector<8x32xbf16>
      %c0_42 = arith.constant 0 : index
      %c0_43 = arith.constant 0 : index
      %56 = vector.load %arg11[%c0_42, %c0_43] : memref<8x32xbf16, #tpu.memory_space<vmem>>, vector<8x32xbf16>
      tpu.vector_store %arg11[%c0_42, %c0_43], %55 {strides = array<i32>} : memref<8x32xbf16, #tpu.memory_space<vmem>>, vector<8x32xbf16>,
    } else {
    }
    %c0 = arith.constant 0 : index
    %c0_1 = arith.constant 0 : index
    %c0_2 = arith.constant 0 : index
    %3 = vector.load %arg6[%c0, %c0_1, %c0_2] : memref<1x8x32xbf16, #tpu.memory_space<vmem>>, vector<1x8x32xbf16>
    %4 = vector.shape_cast %3 : vector<1x8x32xbf16> to vector<8x32xbf16>
    %c0_3 = arith.constant 0 : index
    %c0_4 = arith.constant 0 : index
    %c0_5 = arith.constant 0 : index
    %5 = vector.load %arg7[%c0_3, %c0_4, %c0_5] : memref<1x8x32xbf16, #tpu.memory_space<vmem>>, vector<1x8x32xbf16>
    %6 = vector.shape_cast %5 : vector<1x8x32xbf16> to vector<8x32xbf16>
    %c0_6 = arith.constant 0 : index
    %c0_7 = arith.constant 0 : index
    %7 = vector.load %arg11[%c0_6, %c0_7] : memref<8x32xbf16, #tpu.memory_space<vmem>>, vector<8x32xbf16>
    %cst = arith.constant dense<0.000000e+00> : vector<8x8xf32>
    %8 = tpu.matmul %7, %4, %cst {dimension_numbers = #tpu.dot_dimension_numbers<[1], [1], [0], [0], [0, 0, 1, 0], [], []>} : vector<8x32xbf16>, vector<8x32xbf16>, vector<8x8xf32> -> vector<8x8xf32>
    %c0_8 = arith.constant 0 : index
    %c0_9 = arith.constant 0 : index
    %9 = vector.load %arg12[%c0_8, %c0_9] : memref<8x128xf32, #tpu.memory_space<vmem>>, vector<8x128xf32>
    %cst_10 = arith.constant dense<0xFF800000> : vector<8xf32>
    %10 = vector.multi_reduction <maximumf>, %8, %cst_10 [1] : vector<8x8xf32> to vector<8xf32>
    %11 = vector.shape_cast %10 : vector<8xf32> to vector<8x1xf32>
    %12 = vector.broadcast %11 : vector<8x1xf32> to vector<8x128xf32>
    %13 = arith.maximumf %9, %12 : vector<8x128xf32>
    %14 = arith.subf %9, %13 : vector<8x128xf32>
    %15 = math.exp %14 : vector<8x128xf32>
    %16 = vector.extract_strided_slice %13 {offsets = [0, 0], sizes = [8, 1], strides = [1, 1]} : vector<8x128xf32> to vector<8x1xf32>
    %17 = vector.broadcast %16 : vector<8x1xf32> to vector<8x8xf32>
    %18 = arith.subf %8, %17 : vector<8x8xf32>
    %19 = math.exp %18 : vector<8x8xf32>
    %c0_11 = arith.constant 0 : index
    %c0_12 = arith.constant 0 : index
    %20 = vector.load %arg13[%c0_11, %c0_12] : memref<8x128xf32, #tpu.memory_space<vmem>>, vector<8x128xf32>
    %21 = arith.mulf %15, %20 : vector<8x128xf32>
    %cst_13 = arith.constant dense<0.000000e+00> : vector<8xf32>
    %22 = vector.multi_reduction <add>, %19, %cst_13 [1] : vector<8x8xf32> to vector<8xf32>
    %23 = vector.shape_cast %22 : vector<8xf32> to vector<8x1xf32>
    %24 = vector.broadcast %23 : vector<8x1xf32> to vector<8x128xf32>
    %25 = arith.addf %21, %24 : vector<8x128xf32>
    %c0_14 = arith.constant 0 : index
    %c0_15 = arith.constant 0 : index
    %26 = vector.load %arg13[%c0_14, %c0_15] : memref<8x128xf32, #tpu.memory_space<vmem>>, vector<8x128xf32>
    tpu.vector_store %arg13[%c0_14, %c0_15], %25 {strides = array<i32>} : memref<8x128xf32, #tpu.memory_space<vmem>>, vector<8x128xf32>,
    %27 = vector.extract_strided_slice %15 {offsets = [0, 0], sizes = [8, 1], strides = [1, 1]} : vector<8x128xf32> to vector<8x1xf32>
    %c0_16 = arith.constant 0 : index
    %c0_17 = arith.constant 0 : index
    %28 = vector.load %arg14[%c0_16, %c0_17] : memref<8x32xf32, #tpu.memory_space<vmem>>, vector<8x32xf32>
    %29 = vector.broadcast %27 : vector<8x1xf32> to vector<8x32xf32>
    %30 = arith.mulf %29, %28 : vector<8x32xf32>
    %31 = arith.truncf %19 : vector<8x8xf32> to vector<8x8xbf16>
    %cst_18 = arith.constant dense<0.000000e+00> : vector<8x32xf32>
    %32 = tpu.matmul %31, %6, %cst_18 {dimension_numbers = #tpu.dot_dimension_numbers<[1], [0], [0], [1], [0, 0, 1, 1], [], []>} : vector<8x8xbf16>, vector<8x32xbf16>, vector<8x32xf32> -> vector<8x32xf32>
    %33 = arith.addf %30, %32 : vector<8x32xf32>
    %c0_19 = arith.constant 0 : index
    %c0_20 = arith.constant 0 : index
    %34 = vector.load %arg14[%c0_19, %c0_20] : memref<8x32xf32, #tpu.memory_space<vmem>>, vector<8x32xf32>
    tpu.vector_store %arg14[%c0_19, %c0_20], %33 {strides = array<i32>} : memref<8x32xf32, #tpu.memory_space<vmem>>, vector<8x32xf32>,
    %c0_21 = arith.constant 0 : index
    %c0_22 = arith.constant 0 : index
    %35 = vector.load %arg12[%c0_21, %c0_22] : memref<8x128xf32, #tpu.memory_space<vmem>>, vector<8x128xf32>
    tpu.vector_store %arg12[%c0_21, %c0_22], %13 {strides = array<i32>} : memref<8x128xf32, #tpu.memory_space<vmem>>, vector<8x128xf32>,
    %c0_i32_23 = arith.constant 0 : i32
    %36 = arith.cmpi eq, %arg2, %c0_i32_23 : i32
    %37 = arith.extui %36 : i1 to i32
    %c0_i32_24 = arith.constant 0 : i32
    %38 = arith.cmpi ne, %37, %c0_i32_24 : i32
    scf.if %38 {
      %c0_25 = arith.constant 0 : index
      %c0_26 = arith.constant 0 : index
      %39 = vector.load %arg13[%c0_25, %c0_26] : memref<8x128xf32, #tpu.memory_space<vmem>>, vector<8x128xf32>
      %40 = tpu.reciprocal %39 {approx = true} : vector<8x128xf32> -> vector<8x128xf32>
      %c0_27 = arith.constant 0 : index
      %c0_28 = arith.constant 0 : index
      %41 = vector.load %arg14[%c0_27, %c0_28] : memref<8x32xf32, #tpu.memory_space<vmem>>, vector<8x32xf32>
      %42 = vector.extract_strided_slice %40 {offsets = [0, 0], sizes = [8, 1], strides = [1, 1]} : vector<8x128xf32> to vector<8x1xf32>
      %43 = vector.broadcast %42 : vector<8x1xf32> to vector<8x32xf32>
      %44 = arith.mulf %41, %43 : vector<8x32xf32>
      %45 = arith.truncf %44 : vector<8x32xf32> to vector<8x32xbf16>
      %c0_29 = arith.constant 0 : index
      %c0_30 = arith.constant 0 : index
      %46 = vector.load %arg8[%c0_29, %c0_30] : memref<32x32xbf16, #tpu.memory_space<vmem>>, vector<32x32xbf16>
      %cst_31 = arith.constant dense<0.000000e+00> : vector<8x32xf32>
      %47 = tpu.matmul %45, %46, %cst_31 {dimension_numbers = #tpu.dot_dimension_numbers<[1], [0], [0], [1], [0, 0, 1, 1], [], []>} : vector<8x32xbf16>, vector<32x32xbf16>, vector<8x32xf32> -> vector<8x32xf32>
      %c0_32 = arith.constant 0 : index
      %c0_33 = arith.constant 0 : index
      %48 = vector.load %arg9[%c0_32, %c0_33] : memref<1x32xf32, #tpu.memory_space<vmem>>, vector<1x32xf32>
      %49 = vector.shape_cast %48 : vector<1x32xf32> to vector<32xf32>
      %50 = vector.shape_cast %49 : vector<32xf32> to vector<1x32xf32>
      %51 = vector.broadcast %50 : vector<1x32xf32> to vector<8x32xf32>
      %52 = arith.addf %47, %51 : vector<8x32xf32>
      %c0_34 = arith.constant 0 : index
      %c0_35 = arith.constant 0 : index
      %c0_36 = arith.constant 0 : index
      %53 = vector.load %arg3[%c0_34, %c0_35, %c0_36] : memref<1x8x32xf32, #tpu.memory_space<vmem>>, vector<1x8x32xf32>
      %54 = vector.shape_cast %53 : vector<1x8x32xf32> to vector<8x32xf32>
      %55 = arith.addf %52, %54 : vector<8x32xf32>
      %c0_37 = arith.constant 0 : index
      %c0_38 = arith.constant 0 : index
      %c0_39 = arith.constant 0 : index
      %56 = vector.load %arg10[%c0_37, %c0_38, %c0_39] : memref<1x8x32xf32, #tpu.memory_space<vmem>>, vector<1x8x32xf32>
      %57 = vector.shape_cast %56 : vector<1x8x32xf32> to vector<8x32xf32>
      %58 = vector.shape_cast %55 : vector<8x32xf32> to vector<1x8x32xf32>
      tpu.vector_store %arg10[%c0_37, %c0_38, %c0_39], %58 {strides = array<i32>} : memref<1x8x32xf32, #tpu.memory_space<vmem>>, vector<1x8x32xf32>,
    } else {
    }
    return
  }
  func.func @transform_0(%arg0: i32, %arg1: i32, %arg2: i32) -> (i32, i32, i32) {
    %c0_i32 = arith.constant 0 : i32
    %c0_i32_0 = arith.constant 0 : i32
    return %arg0, %arg1, %c0_i32 : i32, i32, i32
  }
  func.func @transform_1(%arg0: i32, %arg1: i32, %arg2: i32) -> (i32, i32) {
    %c0_i32 = arith.constant 0 : i32
    %c0_i32_0 = arith.constant 0 : i32
    %c0_i32_1 = arith.constant 0 : i32
    return %c0_i32, %c0_i32_0 : i32, i32
  }
  func.func @transform_2(%arg0: i32, %arg1: i32, %arg2: i32) -> (i32, i32) {
    %c0_i32 = arith.constant 0 : i32
    %c0_i32_0 = arith.constant 0 : i32
    %c0_i32_1 = arith.constant 0 : i32
    return %c0_i32, %c0_i32_0 : i32, i32
  }
  func.func @transform_3(%arg0: i32, %arg1: i32, %arg2: i32) -> (i32, i32, i32) {
    %c0_i32 = arith.constant 0 : i32
    %c0_i32_0 = arith.constant 0 : i32
    %c0_i32_1 = arith.constant 0 : i32
    return %arg0, %c0_i32, %c0_i32_0 : i32, i32, i32
  }
  func.func @transform_4(%arg0: i32, %arg1: i32, %arg2: i32) -> (i32, i32, i32) {
    %c0_i32 = arith.constant 0 : i32
    %c0_i32_0 = arith.constant 0 : i32
    %c0_i32_1 = arith.constant 0 : i32
    return %arg0, %c0_i32, %c0_i32_0 : i32, i32, i32
  }
  func.func @transform_5(%arg0: i32, %arg1: i32, %arg2: i32) -> (i32, i32) {
    %c0_i32 = arith.constant 0 : i32
    %c0_i32_0 = arith.constant 0 : i32
    %c0_i32_1 = arith.constant 0 : i32
    return %c0_i32, %c0_i32_0 : i32, i32
  }
  func.func @transform_6(%arg0: i32, %arg1: i32, %arg2: i32) -> (i32, i32) {
    %c0_i32 = arith.constant 0 : i32
    %c0_i32_0 = arith.constant 0 : i32
    %c0_i32_1 = arith.constant 0 : i32
    return %c0_i32, %c0_i32_0 : i32, i32
  }
  func.func @transform_7(%arg0: i32, %arg1: i32, %arg2: i32) -> (i32, i32, i32) {
    %c0_i32 = arith.constant 0 : i32
    %c0_i32_0 = arith.constant 0 : i32
    return %arg0, %arg1, %c0_i32 : i32, i32, i32
  }
}

</mosaic_0001>

<bundles_post_ra>
// kernel: attention_forward.2
= control target key start
LH: loop header
LB: loop body
LE: loop exit
PB: predicated region body
PF: predicated region fallthrough
CT: control target
= control target key end

     0   :  { %vm46_vm0 = vcmask 261120   ;;  %vm66_vm1 = vcmask 257024   ;;  %s210_s1 = inlined_call_operand.vmem [shape: bf16[32,32], index: 1, kind: input, shape index: {}]   ;;  %s211_s2 = inlined_call_operand.vmem [shape: bf16[32,32], index: 2, kind: input, shape index: {}]   ;;  %s212_s0 = inlined_call_operand.vmem [shape: f32[16,32], index: 0, kind: input, shape index: {}]   ;;  %s213_s3 = inlined_call_operand.vmem [shape: f32[1,32], index: 3, kind: input, shape index: {}]   ;;  %s214_s4 = inlined_call_operand.vmem [shape: f32[1,32], index: 4, kind: input, shape index: {}]   ;;  %s215_s5 = inlined_call_operand.vmem [shape: bf16[16,32], index: 5, kind: output, shape index: {0}]   ;;  %s216_s6 = inlined_call_operand.vmem [shape: bf16[16,32], index: 6, kind: output, shape index: {1}]  }
   0x1   :  { %v134_v0 = vld [vmem:[%s210_s1 + $0x8] sm:$0xff]  ;;  %v133_v2 = vld [vmem:[%s210_s1] sm:$0xff] }
   0x2   :  { %v136_v1 = vld [vmem:[%s211_s2 + $0x8] sm:$0xff]  ;;  %v135_v3 = vld [vmem:[%s211_s2] sm:$0xff]  ;;  %56 = vmatpush.bf16.msra.mxu0 %v134_v0 }
   0x3   :  { %95 = vmatpush.bf16.msra.mxu1 %v136_v1  ;;  %v23_v4 = vld [vmem:[%s212_s0] sm:$0xff]  ;;  %v24_v5 = vld [vmem:[%s212_s0 + $0x8] sm:$0xff] }
   0x4   :  { %v25_v6 = vpack.c.bf16 %v24_v5, %v23_v4  ;;  %v137_v7 = vld [vmem:[%s213_s3] ss:$0 sm:$0xff] }
   0x5   :  { %v138_v8 = vld [vmem:[%s214_s4] ss:$0 sm:$0xff] }
   0x6   :  { %57 = vmatpush.bf16.msra.mxu0 %v133_v2 }
   0x7   :  { %96 = vmatpush.bf16.msra.mxu1 %v135_v3 }
   0x9   :  { %123 = vmatmul.msk.bf16.vlgmr.msra.gmra.mxu0 %vm46_vm0, %v25_v6 }
   0xa   :  { %132 = vmatmul.msk.bf16.vlgmr.msra.gmra.mxu1 %vm46_vm0, %v25_v6 }
  0x86   :  { %v59_v9 = vpop.f32.mrf.mxu0 }
  0x87   :  { %v98_v10 = vpop.f32.mrf.mxu1  ;;  %v60_v11 = vadd.f32 %v137_v7, %v59_v9 }
  0x88   :  { %v99_v12 = vadd.f32 %v138_v8, %v98_v10 }
  0x89   :  { %v64_v13 = vpack.c.bf16 %v60_v11, %v60_v11 }
  0x8a   :  { %v103_v14 = vpack.c.bf16 %v99_v12, %v99_v12 }
  0x8b   :  { %67 = vst.msk [vmem:[%s215_s5] sm:$0xf] %vm66_vm1, %v64_v13 }
  0x8c   :  { %105 = vst.msk [vmem:[%s216_s6] sm:$0xf] %vm66_vm1, %v103_v14 }
  0x8e   :  { %v61_v15 = vpop.f32.mrf.mxu0 }
  0x8f   :  { %v100_v16 = vpop.f32.mrf.mxu1  ;;  %v62_v17 = vadd.f32 %v137_v7, %v61_v15 }
  0x90   :  { %v101_v18 = vadd.f32 %v138_v8, %v100_v16 }
  0x91   :  { %v65_v19 = vpack.c.bf16 %v62_v17, %v62_v17 }
  0x92   :  { %v104_v20 = vpack.c.bf16 %v101_v18, %v101_v18 }
  0x93   :  { %68 = vst.msk [vmem:[%s215_s5 + $0x4] sm:$0xf] %vm66_vm1, %v65_v19 }
  0x94   :  { %106 = vst.msk [vmem:[%s216_s6 + $0x4] sm:$0xf] %vm66_vm1, %v104_v20 }

// kernel: attention_forward.3
= control target key start
LH: loop header
LB: loop body
LE: loop exit
PB: predicated region body
PF: predicated region fallthrough
CT: control target
= control target key end

     0   :  { %12 = vsyncpa [#allocation7], 0  ;;  %s1002_s0 = inlined_call_operand.vmem [shape: f32[2,8,32], index: 0, kind: input, shape index: {}]   ;;  %s1003_s1 = inlined_call_operand.vmem [shape: bf16[32,32], index: 1, kind: input, shape index: {}]   ;;  %s1004_s2 = inlined_call_operand.vmem [shape: f32[1,32], index: 2, kind: input, shape index: {}]   ;;  %s1005_s3 = inlined_call_operand.vmem [shape: bf16[2,8,32], index: 3, kind: input, shape index: {}]   ;;  %s1006_s4 = inlined_call_operand.vmem [shape: bf16[2,8,32], index: 4, kind: input, shape index: {}]   ;;  %s1007_s5 = inlined_call_operand.vmem [shape: bf16[32,32], index: 5, kind: input, shape index: {}]   ;;  %s1008_s6 = inlined_call_operand.vmem [shape: f32[1,32], index: 6, kind: input, shape index: {}]   ;;  %s1009_s7 = inlined_call_operand.hbm [shape: f32[2,8,32], index: 7, kind: output, shape index: {}]  }
   0x1   :  { %14 = vsyncpa [#allocation7 + $0x1], 0  ;;  %s862_s24 = smov 0   ;;  %s864_s25 = smov 0  }
   0x2   :  { %s866_s26 = smov 0   ;;  %s868_s27 = smov 0  }
   0x3   :  { %s870_s28 = smov 0   ;;  %s872_s29 = smov 0  }
   0x4 LB: > { %s635_s30 = sadd.s32 4294967295, %s818_s29   ;;  %s636_s8 = sadd.s32 4294967294, %s818_s29   ;;  %s818_s29 = sphi %s872_s29, %s20_s29   ;;  %s814_s28 = sphi %s870_s28, %s1016_s28   ;;  %s810_s27 = sphi %s868_s27, %s1015_s27   ;;  %s806_s26 = sphi %s866_s26, %s1014_s26   ;;  %s802_s25 = sphi %s864_s25, %s1013_s25   ;;  %s798_s24 = sphi %s862_s24, %s1012_s24  }
   0x5   : > { %s39_s9 = sadd.s32 1, %s814_s28  ;;  %s212_s10 = sadd.s32 1, %s806_s26 }
   0x6   : > { %p41_p0 = scmp.ge.s32.totalorder %s39_s9, 2  ;;  %p222_p1 = scmp.ne.s32.totalorder %s806_s26, %s802_s25 }
   0x7   : > { %p223_p2 = scmp.eq.s32.totalorder %s635_s30, 1  ;;  %p228_p3 = scmp.ne.s32.totalorder %s802_s25, %s798_s24 }
   0x8   : > { %s1018_s9 = smov (%p41_p0, %s39_s9), 0  ;;  %p229_p5 = scmp.eq.s32.totalorder %s636_s8, 1 }
   0x9   : > { %p902_p4 = por %p223_p2, %p222_p1  ;;  %s207_s12 = ssub.s32 %s814_s28, %s1018_s9 }
   0xa   : > { %p639_p6 = scmp.ge.s32.totalorder %s818_s29, 1  ;;  %p210_p7 = scmp.eq.s32.totalorder %s207_s12, 0 }
   0xb   : > { %p909_p8 = por %p229_p5, %p228_p3  ;;  %p283_p9 = scmp.lt.s32.totalorder %s818_s29, 3 }
   0xc   : > { %s915_s14 = scalar_select %p210_p7, %s806_s26, %s212_s10  }
   0xd   : > { %p284_p10 = pnand %p639_p6, %p283_p9 }
   0xe   : > { %p325_p11 = scmp.lt.s32.totalorder (!%p284_p10), %s810_s27, 1  ;;  %s665_s10 = sshll.u32 (!%p284_p10), %s810_s27, 3 }
   0xf   : > { %287 = sbr.rel (%p284_p10) target bundleno = 896 (0x380), region = 48  ;;  %s532_s18 = scalar_lea.hbm (!%p284_p10), %s1009_s7, %s665_s10 }
  0x10   : > { %s536_s21 = sshll.u32 (!%p284_p10), %s532_s18, 4  ;;  %s537_s21 = int_to_ptr.hbm [resolvable:$true] %s536_s21 }
  0x11   : > { %s754_s22 = sshra.s32 (!%p284_p10), %s537_s21, 4  ;;  %s755_s22 = int_to_ptr.hbm [resolvable:$true] %s754_s22 }
  0x12   : > { %p761_p1 = scmp.lt.s32.totalorder (!%p284_p10), %s755_s22, %s1009_s7 }
  0x14   : > { %v669_v0 = vld [vmem:[%s1003_s1 + $0x8] sm:$0xff]  ;;  %v668_v1 = vld [vmem:[%s1003_s1] sm:$0xff]  ;;  %s925_s19 = scalar_select %p325_p11, %s810_s27, 1  ;;  %vm347_vm0 = vcmask 261120   ;;  %vm388_vm1 = vcmask 257024   ;;  %v820_v12 = vmov 0  }
  0x15   : > { %380 = vmatpush.bf16.msra.mxu0 %v669_v0  ;;  %v732_v6 = vld [vmem:[%s1004_s2] ss:$0 sm:$0xff]  ;;  %729 = vset.pattern.permute.xlu0 %v820_v12  ;;  %vm414_vm2 = vcmask 64512   ;;  %vm448_vm3 = vcmask 1043456   ;;  %v821_v28 = vmov 0.0   ;;  %v671_v29 = vld [vmem:[%s1007_s5 + $0x8] sm:$0xff] }
  0x16   : > { %s641_s20 = sshll.u32 %s925_s19, 3  ;;  %s642_s30 = sshll.u32 %s925_s19, 2  ;;  %730 = vset.pattern.permute.xlu1 %v820_v12  ;;  %731 = vset.pattern.permute.xlu2 %v820_v12  ;;  %348 = vst.msk [vmem:[#allocation5] sm:$0xff] %vm347_vm0, %v821_v28  ;;  %v670_v40 = vld [vmem:[%s1007_s5] sm:$0xff] }
  0x17   : > { %s331_s23 = scalar_lea.vmem %s1002_s0, %s641_s20  ;;  %s335_s12 = scalar_lea.vmem %s1005_s3, %s642_s30  ;;  %510 = vmatpush.bf16.msra.mxu3 %v671_v29  ;;  %v733_v45 = vld [vmem:[%s1008_s6] ss:$0 sm:$0xff] }
  0x18   : > { %v931_v2 = vld [vmem:[%s331_s23] sm:$0xff]  ;;  %s339_s19 = scalar_lea.vmem %s1006_s4, %s642_s30  ;;  %s322_s30 = sand.u32 1, %s802_s25  }
  0x19   : > { %381 = vmatpush.bf16.msra.mxu0 %v668_v1  ;;  %v350_v3 = vpack.c.bf16 %v931_v2, %v931_v2  ;;  %v390_v4 = vld [vmem:[%s335_s12] sm:$0xf]  ;;  %s640_s8 = sshll.u32 %s322_s30, 3  ;;  %s521_s27 = scalar_lea.sflag [#allocation7], %s322_s30 }
  0x1a   : > { %v398_v5 = vsel %vm347_vm0, %v390_v4, 0  ;;  %v391_v17 = vld [vmem:[%s339_s19] sm:$0xf]  ;;  %s324_s19 = scalar_lea.vmem [#allocation6], %s640_s8  ;;  %s756_s23 = scalar_lea.hbm %s755_s22, 8 }
  0x1b   : > { %407 = vmatpush.bf16.xpose.msra.mxu1 %v398_v5  ;;  %v450_v18 = vsel %vm448_vm3, %v391_v17, 0  ;;  %511 = vmatpush.bf16.msra.mxu3 %v670_v40  ;;  %s534_s20 = sshll.u32 %s324_s19, 4  ;;  %p757_p12 = scmp.ne.s32.totalorder %s755_s22, %s756_s23  ;;  %s535_s20 = int_to_ptr.vmem [resolvable:$true] %s534_s20 }
  0x1c   : > { %652 = vmatmul.msk.bf16.vlgmr.msra.gmra.mxu0 %vm347_vm0, %v350_v3  ;;  %459 = vmatpush.bf16.msra.mxu2 %v450_v18  ;;  %s760_s8 = scalar_lea.hbm %s1009_s7, 16 }
  0x1d   : > { %v437_v35 = vld [vmem:[#allocation5] sm:$0xff]  ;;  %p758_p13 = pnand %p757_p12, %p902_p4  ;;  %p762_p2 = scmp.lt.s32.totalorder %s760_s8, %s756_s23 }
  0x1f   : > { %p759_p0 = pneg %p758_p13  ;;  %p763_p3 = por %p762_p2, %p761_p1 }
  0x21   : > { %p764_p5 = pnand %p763_p3, %p759_p0 }
  0x99   : > { %v383_v7 = vpop.f32.mrf.mxu0 }
  0x9a   : > { %v384_v8 = vadd.f32 %v732_v6, %v383_v7 }
  0x9c   : > { %v387_v9 = vpack.c.bf16 %v384_v8, %v384_v8 }
  0x9e   : > { %389 = vst.msk [vmem:[#allocation2] sm:$0xf] %vm388_vm1, %v387_v9 }
  0xa1   : > { %v385_v10 = vpop.f32.mrf.mxu0 }
  0xa5   : > { %v392_v11 = vld [vmem:[#allocation2] sm:$0xf] }
  0xa6   : > { %653 = vmatmul.msk.bf16.vlgmr.msra.gmra.mxu1 %vm347_vm0, %v392_v11 }
 0x123   : > { %v409_v13 = vpop.f32.mrf.mxu1 }
 0x124   : > { %v415_v14 = vsel %vm414_vm2, %v409_v13, -inf }
 0x125   : > { %416 = vmax.xlane.f32.xlu0 %v415_v14 }
 0x12b   : > { %v411_v15 = vpop.f32.mrf.mxu1 }
 0x198   : > { %v417_v16 = vpop.xlane.xlu0 %416 }
 0x199   : > { %424 = vperm.xlu0 %729, %v417_v16   ;;  %v419_v25 = vsub.f32 -inf, %v417_v16 }
 0x19b   : > { %v420_v26 = vmul.f32 1.442695, %v419_v25 }
 0x20b   : > { %v425_v19 = vpop.permute.xlu0 %424 }
 0x20c   : > { %v427_v20 = vsub.f32 %v409_v13, %v425_v19 }
 0x20e   : > { %v428_v21 = vmul.f32 1.442695, %v427_v20 }
 0x210   : > { %734 = vpow2.f32 %v428_v21 }
 0x211   : > { %736 = vpow2.f32 %v420_v26 }
 0x216   : > { %v735_v22 = vpop.eup %734 }
 0x217   : > { %v432_v23 = vsel %vm414_vm2, %v735_v22, 0.0  ;;  %v444_v24 = vpack.c.bf16 %v735_v22, %v735_v22  ;;  %v737_v27 = vpop.eup %736 }
 0x218   : > { %433 = vadd.xlane.f32.xlu1 %v432_v23  ;;  %v431_v30 = vmul.f32 0.0, %v737_v27 }
 0x219   : > { %654 = vmatmul.msk.bf16.vlgmr.msra.gmra.mxu2 %vm414_vm2, %v444_v24 }
 0x231   : > { %440 = vperm.xlu1 %730, %v737_v27  }
 0x28b   : > { %v434_v31 = vpop.xlane.xlu1 %433 }
 0x28c   : > { %v435_v32 = vadd.f32 %v434_v31, %v431_v30 }
 0x28e   : > { %738 = vrcp.f32 %v435_v32 }
 0x294   : > { %v739_v33 = vpop.eup %738 }
 0x295   : > { %476 = vperm.xlu2 %731, %v739_v33  }
 0x29c   : > { %v461_v34 = vpop.f32.mrf.mxu2 }
 0x2a3   : > { %v441_v36 = vpop.permute.xlu1 %440 }
 0x2a4   : > { %v443_v37 = vmul.f32 %v441_v36, %v437_v35  ;;  %v463_v38 = vpop.f32.mrf.mxu2 }
 0x2a6   : > { %v465_v39 = vadd.f32 %v461_v34, %v443_v37 }
 0x2a8   : > { %466 = vst.msk [vmem:[#allocation5] sm:$0xff] %vm347_vm0, %v465_v39 }
 0x2af   : > { %v473_v42 = vld [vmem:[#allocation5] sm:$0xff] }
 0x2ef   : > { %v477_v41 = vpop.permute.xlu2 %476 }
 0x2f0   : > { %v479_v43 = vmul.f32 %v477_v41, %v473_v42 }
 0x2f2   : > { %v480_v44 = vpack.c.bf16 %v479_v43, %v479_v43 }
 0x2f4   : > { %663 = vmatmul.msk.bf16.vlgmr.msra.gmra.mxu3 %vm347_vm0, %v480_v44 }
 0x377   : > { %v513_v46 = vpop.f32.mrf.mxu3 }
 0x378   : > { %v514_v47 = vadd.f32 %v733_v45, %v513_v46 }
 0x37a   : > { %v518_v48 = vadd.f32 %v514_v47, %v931_v2 }
 0x37c   : > { %519 = vst.msk [vmem:[%s324_s19] sm:$0xff] %vm347_vm0, %v518_v48 }
 0x37d   : > { %767 = shalt.err (!%p764_p5)
}
 0x37e   : > { %672 = dma.vmem_to_hbm [thread:$0]  (%p902_p4), %s535_s20, 128, %s537_s21, %s521_s27  }
 0x37f   : > { %v515_v49 = vpop.f32.mrf.mxu3 }
 0x380 PF: > { %p678_p6 = scmp.ge.s32.totalorder %s818_s29, 2  ;;  %s548_s30 = sand.u32 1, %s798_s24  }
 0x381   : > { %s549_s17 = scalar_lea.sflag [#allocation7], %s548_s30 }
 0x382   : > { %p675_p7 = pnand %p678_p6, %p909_p8 }
 0x384   : > { %p676_p9 = pneg %p675_p7 }
 0x386   : > { %793 = dma.done.wait (%p676_p9), %s549_s17, 128  }
 0x387   : > { %795 = vsyncadd (%p676_p9), %s549_s17, 4294967168  ;;  %s20_s29 = sadd.s32 1, %s818_s29   ;;  %s1012_s24 = smov %s802_s25 }
 0x388   : > { %p17_p10 = scmp.ge.s32.totalorder %s20_s29, 4   ;;  %s1013_s25 = smov %s806_s26 }
 0x389   : > { %s1014_s26 = smov %s915_s14  ;;  %s1015_s27 = smov %s814_s28 }
 0x38a   : > { %s1016_s28 = smov %s1018_s9  ;;  %19 = sbr.rel (!%p17_p10) target bundleno = 4 (0x4), region = 97 }
 0x38f   :  { %555 = vsyncpa [#allocation7], 1 }
 0x390   :  { %557 = vsyncpa [#allocation7 + $0x1], 1 }

</bundles_post_ra>
